<compile_context>
chip_gen: v7x
topology: tpu7x:2x2x1
jax: 0.10.0
libtpu: 0.0.40
codegen_flags: <defaults>
</compile_context>

<pallas_src>
import jax
import jax.numpy as jnp
from jax.experimental import pallas as pl
from jax.experimental.pallas import tpu as pltpu

VOCAB = 100
HIDDEN = 256
VOCAB_PAD = 128        # vocab/K dim zero-padded to one 128-wide MXU pass
TOK_DEFAULT = 2048     # tokens per grid step (sweep 1024-4096 per generation)


def _round_up(x, m):
    return ((x + m - 1) // m) * m


def _trunc_to_bf16_f32(x):
    """Truncate f32 values to the nearest-toward-zero bf16-representable f32."""
    u = jax.lax.bitcast_convert_type(x, jnp.uint32)
    return jax.lax.bitcast_convert_type(u & jnp.uint32(0xFFFF0000), jnp.float32)


def _split_table_bf16(table_f32):
    """Exact 3-way bf16 split: hi + mid + lo == table_f32 bitwise (in f32)."""
    hi = _trunc_to_bf16_f32(table_f32)
    r1 = table_f32 - hi            # exact
    mid = _trunc_to_bf16_f32(r1)
    lo = r1 - mid                  # exact, bf16-representable
    return jnp.stack(
        [hi.astype(jnp.bfloat16), mid.astype(jnp.bfloat16), lo.astype(jnp.bfloat16)],
        axis=0,
    )  # (3, VOCAB_PAD, HIDDEN)


def embedding_kernel(ids_ref, tables_ref, out_ref):
    # ids_ref:    (1, 1, TOK)             int32   lane-dense token ids
    # tables_ref: (3, VOCAB_PAD, HIDDEN)  bf16    hi/mid/lo planes (VMEM resident)
    # out_ref:    (TOK, HIDDEN)           float32
    tok = out_ref.shape[0]
    ids = ids_ref[0]                                                # (1, TOK)
    vocab = jax.lax.broadcasted_iota(jnp.int32, (VOCAB_PAD, tok), 0)
    onehot_t = (vocab == ids).astype(jnp.bfloat16)                  # (VOCAB_PAD, TOK)
    dn = (((0,), (0,)), ((), ()))                                   # contract vocab dim
    acc = jax.lax.dot_general(onehot_t, tables_ref[0], dn,
                              preferred_element_type=jnp.float32)
    acc = acc + jax.lax.dot_general(onehot_t, tables_ref[1], dn,
                                    preferred_element_type=jnp.float32)
    acc = acc + jax.lax.dot_general(onehot_t, tables_ref[2], dn,
                                    preferred_element_type=jnp.float32)
    out_ref[...] = acc                                              # (TOK, HIDDEN) f32


def embedding_lookup(input_ids, table, tok=TOK_DEFAULT):
    """Equivalent of Net.forward: view(-1, seq) then wte(input_ids)."""
    seq = input_ids.shape[-1]
    flat2d = input_ids.reshape(-1, seq)          # torch: input_ids.view(-1, S)
    batch = flat2d.shape[0]
    n = batch * seq

    # Tokens per grid step: multiple of 8, large enough to amortize the
    # ~0.35 us/step pipeline overhead, small enough that there are >= 2 blocks
    # (so both v7x TensorCores get work for mid-sized inputs).
    tok = max(8, _round_up(int(tok), 8))
    tok = min(tok, _round_up(max(-(-n // 2), 8), 8))
    num_blocks = pl.cdiv(n, tok)
    n_ids = num_blocks * tok                     # ids padded; output is NOT padded

    # Pad ids (cheap, 4 B/token) with 0 (a valid id); tail rows of the ragged
    # output block are dropped by Pallas, never written to HBM.
    ids = jnp.pad(flat2d.reshape(-1).astype(jnp.int32), (0, n_ids - n))
    ids = ids.reshape(num_blocks, 1, tok)        # lane-dense id blocks

    table_p = jnp.pad(table.astype(jnp.float32), ((0, VOCAB_PAD - VOCAB), (0, 0)))
    tables = _split_table_bf16(table_p)          # (3, VOCAB_PAD, HIDDEN) bf16

    out = pl.pallas_call(
        embedding_kernel,
        out_shape=jax.ShapeDtypeStruct((n, HIDDEN), jnp.float32),
        grid_spec=pltpu.PrefetchScalarGridSpec(
            num_scalar_prefetch=0,
            grid=(num_blocks,),
            in_specs=[
                pl.BlockSpec((1, 1, tok), lambda i: (i, 0, 0)),              # ids
                pl.BlockSpec((3, VOCAB_PAD, HIDDEN), lambda i: (0, 0, 0)),   # table planes
            ],
            out_specs=pl.BlockSpec((tok, HIDDEN), lambda i: (i, 0)),
        ),
        compiler_params=pltpu.CompilerParams(
            dimension_semantics=("parallel",),
            vmem_limit_bytes=32 * 1024 * 1024,   # safe headroom incl. v5e default
        ),
        cost_estimate=pl.CostEstimate(
            flops=2 * 3 * n_ids * VOCAB_PAD * HIDDEN,
            transcendentals=0,
            bytes_accessed=n_ids * 4 + 3 * VOCAB_PAD * HIDDEN * 2 + n * HIDDEN * 4,
        ),
    )(ids, tables)

    return out.reshape(batch, seq, HIDDEN)


if __name__ == "__main__":
    key = jax.random.PRNGKey(0)
    k_ids, k_ids2, k_w = jax.random.split(key, 3)

    # Deterministic parameters (nn.Embedding(100, 256) default init ~ N(0, 1)).
    wte = jax.random.normal(k_w, (VOCAB, HIDDEN), dtype=jnp.float32)

    # Small example input consistent with the module: batch=2, seq=8 token ids.
    input_ids = jax.random.randint(k_ids, (2, 8), 0, VOCAB, dtype=jnp.int32)
    out = jax.block_until_ready(embedding_lookup(input_ids, wte))
    ref = wte[input_ids.reshape(-1, input_ids.shape[-1])]
    assert out.shape == ref.shape == (2, 8, HIDDEN)
    assert jnp.allclose(out, ref, atol=1e-6), "mismatch vs reference gather (small)"

    # Second check exercising the multi-block pipelined path (2 blocks of 1024).
    input_ids_big = jax.random.randint(k_ids2, (4, 512), 0, VOCAB, dtype=jnp.int32)
    out_big = jax.block_until_ready(embedding_lookup(input_ids_big, wte))
    ref_big = wte[input_ids_big.reshape(-1, input_ids_big.shape[-1])]
    assert out_big.shape == ref_big.shape == (4, 512, HIDDEN)
    assert jnp.allclose(out_big, ref_big, atol=1e-6), "mismatch vs reference gather (tiled)"

    print("KERNEL_OK")
</pallas_src>

<mosaic_0001>
module attributes {stable_mosaic.version = 11 : i64} {
  func.func @embedding_kernel(%arg0: i32, %arg1: memref<1x1x8xi32, #tpu.memory_space<vmem>>, %arg2: memref<3x128x256xbf16, #tpu.memory_space<vmem>>, %arg3: memref<8x256xf32, #tpu.memory_space<vmem>>) attributes {dimension_semantics = [#tpu.dimension_semantics<parallel>], iteration_bounds = array<i64: 2>, scalar_prefetch = 0 : i64, scratch_operands = 0 : i64, tpu.core_type = #tpu.core_type<tc>, window_params = [{transform_indices = @transform_0, window_bounds = array<i64: 1, 1, 8>}, {pipeline_mode = #tpu.pipeline_mode<synchronous>, transform_indices = @transform_1, window_bounds = array<i64: 3, 128, 256>}, {transform_indices = @transform_2, window_bounds = array<i64: 8, 256>}]} {
    %c0 = arith.constant 0 : index
    %c0_0 = arith.constant 0 : index
    %c0_1 = arith.constant 0 : index
    %0 = vector.load %arg1[%c0, %c0_0, %c0_1] : memref<1x1x8xi32, #tpu.memory_space<vmem>>, vector<1x1x8xi32>
    %1 = vector.shape_cast %0 : vector<1x1x8xi32> to vector<1x8xi32>
    %2 = tpu.iota {dimensions = array<i32: 0>} : vector<128x8xi32>
    %3 = vector.broadcast %1 : vector<1x8xi32> to vector<128x8xi32>
    %4 = arith.cmpi eq, %2, %3 : vector<128x8xi32>
    %5 = arith.extui %4 : vector<128x8xi1> to vector<128x8xi32>
    %6 = arith.sitofp %5 : vector<128x8xi32> to vector<128x8xf32>
    %7 = arith.truncf %6 : vector<128x8xf32> to vector<128x8xbf16>
    %c0_2 = arith.constant 0 : index
    %c0_3 = arith.constant 0 : index
    %c0_4 = arith.constant 0 : index
    %8 = vector.load %arg2[%c0_2, %c0_3, %c0_4] : memref<3x128x256xbf16, #tpu.memory_space<vmem>>, vector<1x128x256xbf16>
    %9 = vector.shape_cast %8 : vector<1x128x256xbf16> to vector<128x256xbf16>
    %cst = arith.constant dense<0.000000e+00> : vector<8x256xf32>
    %10 = tpu.matmul %7, %9, %cst {dimension_numbers = #tpu.dot_dimension_numbers<[0], [0], [1], [1], [0, 1, 1, 1], [], []>} : vector<128x8xbf16>, vector<128x256xbf16>, vector<8x256xf32> -> vector<8x256xf32>
    %c1 = arith.constant 1 : index
    %c0_5 = arith.constant 0 : index
    %c0_6 = arith.constant 0 : index
    %11 = vector.load %arg2[%c1, %c0_5, %c0_6] : memref<3x128x256xbf16, #tpu.memory_space<vmem>>, vector<1x128x256xbf16>
    %12 = vector.shape_cast %11 : vector<1x128x256xbf16> to vector<128x256xbf16>
    %cst_7 = arith.constant dense<0.000000e+00> : vector<8x256xf32>
    %13 = tpu.matmul %7, %12, %cst_7 {dimension_numbers = #tpu.dot_dimension_numbers<[0], [0], [1], [1], [0, 1, 1, 1], [], []>} : vector<128x8xbf16>, vector<128x256xbf16>, vector<8x256xf32> -> vector<8x256xf32>
    %14 = arith.addf %10, %13 : vector<8x256xf32>
    %c2 = arith.constant 2 : index
    %c0_8 = arith.constant 0 : index
    %c0_9 = arith.constant 0 : index
    %15 = vector.load %arg2[%c2, %c0_8, %c0_9] : memref<3x128x256xbf16, #tpu.memory_space<vmem>>, vector<1x128x256xbf16>
    %16 = vector.shape_cast %15 : vector<1x128x256xbf16> to vector<128x256xbf16>
    %cst_10 = arith.constant dense<0.000000e+00> : vector<8x256xf32>
    %17 = tpu.matmul %7, %16, %cst_10 {dimension_numbers = #tpu.dot_dimension_numbers<[0], [0], [1], [1], [0, 1, 1, 1], [], []>} : vector<128x8xbf16>, vector<128x256xbf16>, vector<8x256xf32> -> vector<8x256xf32>
    %18 = arith.addf %14, %17 : vector<8x256xf32>
    %c0_11 = arith.constant 0 : index
    %c0_12 = arith.constant 0 : index
    %19 = vector.load %arg3[%c0_11, %c0_12] : memref<8x256xf32, #tpu.memory_space<vmem>>, vector<8x256xf32>
    tpu.vector_store %arg3[%c0_11, %c0_12], %18 {strides = array<i32>} : memref<8x256xf32, #tpu.memory_space<vmem>>, vector<8x256xf32>,
    return
  }
  func.func @transform_0(%arg0: i32) -> (i32, i32, i32) {
    %c0_i32 = arith.constant 0 : i32
    %c0_i32_0 = arith.constant 0 : i32
    %c0_i32_1 = arith.constant 0 : i32
    return %arg0, %c0_i32, %c0_i32_0 : i32, i32, i32
  }
  func.func @transform_1(%arg0: i32) -> (i32, i32, i32) {
    %c0_i32 = arith.constant 0 : i32
    %c0_i32_0 = arith.constant 0 : i32
    %c0_i32_1 = arith.constant 0 : i32
    %c0_i32_2 = arith.constant 0 : i32
    return %c0_i32, %c0_i32_0, %c0_i32_1 : i32, i32, i32
  }
  func.func @transform_2(%arg0: i32) -> (i32, i32) {
    %c0_i32 = arith.constant 0 : i32
    %c0_i32_0 = arith.constant 0 : i32
    return %arg0, %c0_i32 : i32, i32
  }
}

</mosaic_0001>

<bundles_post_ra>
// kernel: tpu_custom_call.1
= control target key start
LH: loop header
LB: loop body
LE: loop exit
PB: predicated region body
PF: predicated region fallthrough
CT: control target
= control target key end

     0   :  { %7 = vsyncpa [#allocation3], 0  ;;  %s1397_s0 = inlined_call_operand.hbm [shape: s32[2,1,8], index: 0, kind: input, shape index: {}]   ;;  %s1398_s1 = inlined_call_operand.hbm [shape: bf16[3,128,256], index: 1, kind: input, shape index: {}]   ;;  %s1399_s2 = inlined_call_operand.hbm [shape: f32[16,256], index: 2, kind: output, shape index: {}]  }
   0x1   :  { %9 = vsyncpa [#allocation3 + $0x1], 0 }
   0x2   :  { %10 = vsyncpa [#allocation6], 0 }
   0x3   :  { %11 = vsyncpa [#allocation4], 0 }
   0x4   :  { %13 = vsyncpa [#allocation4 + $0x1], 0  ;;  %s1145_s9 = smov 0   ;;  %s1147_s10 = smov 0  }
   0x5   :  { %s1149_s11 = smov 0   ;;  %s1151_s12 = smov 0  }
   0x6 LB: > { %s1166_s13 = sadd.s32 4294967295, %s1121_s12   ;;  %s775_s14 = sadd.s32 4294967294, %s1121_s12   ;;  %s1121_s12 = sphi %s1151_s12, %s1419_s12   ;;  %s1117_s11 = sphi %s1149_s11, %s1418_s11   ;;  %s1113_s10 = sphi %s1147_s10, %s1417_s10   ;;  %s1109_s9 = sphi %s1145_s9, %s1416_s9  }
   0x7   : > { %p39_p0 = scmp.ne.s32.totalorder %s1113_s10, %s1109_s9  ;;  %p1400_p1 = scmp.eq.s32.totalorder %s1166_s13, 0 }
   0x8   : > { %p90_p3 = scmp.eq.s32.totalorder %s775_s14, 1  ;;  %p776_p5 = scmp.ge.s32.totalorder %s1121_s12, 1 }
   0x9   : > { %p1175_p4 = por %p1400_p1, %p39_p0  ;;  %p97_p7 = scmp.lt.s32.totalorder %s1121_s12, 3 }
   0xa   : > { %p1180_p6 = por %p90_p3, %p39_p0  ;;  %s1123_s18 = smov [#allocation5]  }
   0xb   : > { %s1403_s15 = scalar_select %p1175_p4, 1, 0 }
   0xc   : > { %s1404_s16 = scalar_select %p1180_p6, 1, 0 }
   0xd   : > { %p1185_p8 = pnand %p776_p5, %p97_p7  ;;  %s109_s19 = sshll.u32 %s1123_s18, 4  ;;  %s1189_s19 = int_to_ptr.vmem [resolvable:$true] %s109_s19 }
   0xe   : > { %s1201_s21 = sadd.s32 1, %s1121_s12   ;;  %s26_s22 = sadd.s32 1, %s1117_s11 }
   0xf   : > { %s1405_s17 = scalar_select %p1185_p8, 1, 0 }
  0x10   : > { %p868_p9 = pneg %p1185_p8  ;;  %s23_s23 = ssub.s32 %s1121_s12, %s1201_s21 }
  0x11   : > { %s993_s26 = scalar_lea.hbm %s1398_s1, 6144 }
  0x12   : > { %p1196_p11 = pnand %p868_p9, %p1400_p1  ;;  %p994_p12 = scmp.ne.s32.totalorder %s1398_s1, %s993_s26 }
  0x13   : > { %p1000_p5 = scmp.lt.u32.totalorder %s993_s26, %s1398_s1 }
  0x14   : > { %p995_p13 = pneg %p1196_p11 }
  0x16   : > { %p996_p0 = pnand %p995_p13, %p994_p12 }
  0x18   : > { %p997_p3 = pneg %p996_p0 }
  0x1a   : > { %p1002_p7 = pnand %p1000_p5, %p997_p3 }
  0x1c   : > { %1005 = shalt.err (!%p1002_p7)
}
  0x1d   : > { %s1006_s3 = scalar_lea.vmem %s1189_s19, 6144  ;;  %p1014_p2 = scmp.lt.s32.totalorder %s1189_s19, %s1189_s19 }
  0x1e   : > { %p1007_p9 = scmp.ne.s32.totalorder %s1189_s19, %s1006_s3  ;;  %p1015_p6 = scmp.lt.s32.totalorder %s1006_s3, %s1006_s3 }
  0x20   : > { %p1009_p10 = pnand %p1007_p9, %p995_p13  ;;  %p1016_p4 = por %p1015_p6, %p1014_p2 }
  0x22   : > { %p1010_p1 = pneg %p1009_p10 }
  0x24   : > { %p1017_p8 = pnand %p1016_p4, %p1010_p1 }
  0x26   : > { %1020 = shalt.err (!%p1017_p8)
}
  0x27   : > { %s1124_s4 = smov 128   ;;  %s1125_s5 = smov 8  }
  0x28   : > { %871 = dma.hbm_to_vmem [thread:$0]  (!%p1196_p11), %s1398_s1, 6144, %s1189_s19, [#allocation6], %s1124_s4, %s1124_s4, %s1125_s5  }
  0x29   : > { %p24_p2 = scmp.eq.s32.totalorder %s23_s23, 0  ;;  %p33_p1 = scmp.ne.s32.totalorder %s1117_s11, %s1113_s10 }
  0x2a   : > { %p34_p4 = scmp.eq.s32.totalorder %s1121_s12, 0  ;;  %p881_p6 = scmp.lt.s32.totalorder %s1121_s12, 2 }
  0x2b   : > { %s1232_s8 = scalar_select %p24_p2, %s1117_s11, %s26_s22  }
  0x2c   : > { %p35_p8 = por %p34_p4, %p33_p1  ;;  %p1407_p10 = scmp.eq.s32.totalorder %s1166_s13, 1 }
  0x2d   : > { %s123_s18 = sand.u32 1, %s1117_s11   ;;  %s779_s24 = sshll.u32 %s1121_s12, 4 }
  0x2e   : > { %p1236_p12 = por %p1407_p10, %p33_p1  ;;  %s1245_s26 = scalar_lea.hbm %s1397_s0, %s779_s24 }
  0x2f   : > { %s126_s19 = scalar_lea.vmem [#allocation2], %s123_s18  ;;  %p1249_p11 = pnand %p881_p6, %p35_p8 }
  0x30   : > { %s133_s22 = sshll.u32 %s126_s19, 4  ;;  %s124_s27 = scalar_lea.sflag [#allocation3], %s123_s18  ;;  %s1247_s22 = int_to_ptr.vmem [resolvable:$true] %s133_s22 }
  0x31   : > { %s1021_s28 = scalar_lea.hbm %s1245_s26, 16  ;;  %p1023_p0 = pneg %p1249_p11 }
  0x32   : > { %p1022_p13 = scmp.ne.s32.totalorder %s1245_s26, %s1021_s28  ;;  %s1026_s3 = scalar_lea.hbm %s1397_s0, 32 }
  0x33   : > { %p1027_p7 = scmp.lt.u32.totalorder %s1245_s26, %s1397_s0  ;;  %p1028_p9 = scmp.lt.u32.totalorder %s1026_s3, %s1021_s28 }
  0x34   : > { %p1024_p3 = pnand %p1023_p0, %p1022_p13  ;;  %p1030_p1 = scmp.lt.u32.totalorder %s1021_s28, %s1245_s26 }
  0x35   : > { %p1029_p2 = por %p1028_p9, %p1027_p7 }
  0x36   : > { %p1025_p5 = pneg %p1024_p3 }
  0x37   : > { %p1031_p4 = por %p1030_p1, %p1029_p2 }
  0x39   : > { %p1032_p6 = pnand %p1031_p4, %p1025_p5 }
  0x3b   : > { %1035 = shalt.err (!%p1032_p6)
}
  0x3c   : > { %s1036_s6 = scalar_lea.vmem %s1247_s22, 16  ;;  %s1126_s7 = smov [#allocation2]  }
  0x3d   : > { %p1037_p8 = scmp.ne.s32.totalorder %s1247_s22, %s1036_s6  ;;  %s1041_s18 = sshll.u32 %s1126_s7, 4  ;;  %s1042_s18 = int_to_ptr.vmem [resolvable:$false] %s1041_s18 }
  0x3e   : > { %s1043_s24 = scalar_lea.vmem %s1042_s18, 32  ;;  %p1044_p3 = scmp.lt.s32.totalorder %s1247_s22, %s1042_s18 }
  0x3f   : > { %p1039_p10 = pnand %p1037_p8, %p1023_p0  ;;  %p1045_p7 = scmp.lt.s32.totalorder %s1043_s24, %s1036_s6 }
  0x41   : > { %p1040_p13 = pneg %p1039_p10  ;;  %p1046_p9 = por %p1045_p7, %p1044_p3 }
  0x43   : > { %p1047_p2 = pnand %p1046_p9, %p1040_p13 }
  0x45   : > { %1050 = shalt.err (!%p1047_p2)
}
  0x46   : > { %875 = dma.hbm_to_vmem [thread:$0]  (!%p1249_p11), %s1245_s26, 16, %s1247_s22, %s124_s27  }
  0x47   : > { %p1410_p5 = scmp.ne.s32.totalorder %s1405_s17, 0 }
  0x48   : > { %s1281_s25 = sand.u32 (!%p1410_p5), 1, %s1113_s10   ;;  %p1411_p0 = scmp.ne.s32.totalorder (!%p1410_p5), %s1403_s15, 0 }
  0x49   : > { %142 = sbr.rel (%p1410_p5) target bundleno = 458 (0x1ca), region = 28  ;;  %s145_s20 = scalar_lea.sflag (!%p1410_p5), [#allocation3], %s1281_s25 }
  0x4a   : > { %s147_s19 = scalar_lea.vmem (!%p1410_p5), [#allocation2], %s1281_s25 }
  0x50   : > { %1096 = dma.done.wait (%p1411_p0), %s145_s20, 16  }
  0x51   : > { %1098 = vsyncadd (%p1411_p0), %s145_s20, 4294967280  ;;  %p1412_p1 = scmp.eq.s32.totalorder %s1166_s13, 0 }
  0x53   : > { %1100 = dma.done.wait (%p1412_p1), [#allocation6], 6144   ;;  %p1413_p11 = pmov %p1412_p1 }
  0x54   : > { %v173_v0 = vlaneseq  ;;  %v1127_v1 = vmov 0   ;;  %v1302_v8 = vld [vmem:[%s147_s19] ss:$0 sm:$0xff]  ;;  %v921_v11 = vld [vmem:[#allocation5 + $0x4] ss:$8 sps:$4 sm:$0xff]   ;;  %v1128_v12 = vmov 0.0  }
  0x55   : > { %1102 = vsyncadd (%p1413_p11), [#allocation6], 4294961152  ;;  %411 = vmatprep.mubr.bf16.mxu1 %v1127_v1  ;;  %532 = vmatprep.mubr.bf16.mxu0 %v1127_v1  ;;  %v923_v18 = vld [vmem:[#allocation5 + $0x84] ss:$8 sps:$4 sm:$0xff]   ;;  %v925_v19 = vld [vmem:[#allocation5] ss:$8 sps:$4 sm:$0xff]  }
  0x56   : > { %v1295_v2 = vshrl.u32 %v173_v0, 7  ;;  %500 = vmatprep.subr.bf16.mxu0 %v921_v11  ;;  %v926_v20 = vld [vmem:[#allocation5 + $0x80] ss:$8 sps:$4 sm:$0xff]   ;;  %v927_v22 = vld [vmem:[#allocation5 + $0x14] ss:$8 sps:$4 sm:$0xff]   ;;  %379 = vmatprep.subr.bf16.mxu1 %v923_v18  ;;  %s782_s15 = sshll.u32 %s1281_s25, 4 }
  0x57   : > { %v929_v26 = vld [vmem:[#allocation5 + $0x94] ss:$8 sps:$4 sm:$0xff]   ;;  %501 = vmatpush1.bf16.msra.mxu0 %v925_v19  ;;  %380 = vmatpush1.bf16.msra.mxu1 %v926_v20  ;;  %v931_v28 = vld [vmem:[#allocation5 + $0x10] ss:$8 sps:$4 sm:$0xff]   ;;  %v933_v30 = vld [vmem:[#allocation5 + $0x24] ss:$8 sps:$4 sm:$0xff]  }
  0x58   : > { %v175_v3 = vadd.s32 8, %v1295_v2  ;;  %v176_v4 = vadd.s32 16, %v1295_v2  ;;  %v177_v5 = vadd.s32 24, %v1295_v2  ;;  %v178_v6 = vadd.s32 32, %v1295_v2  ;;  %v932_v29 = vld [vmem:[#allocation5 + $0x90] ss:$8 sps:$4 sm:$0xff]   ;;  %502 = vmatprep.subr.bf16.mxu0 %v927_v22  ;;  %381 = vmatprep.subr.bf16.mxu1 %v929_v26 }
  0x59   : > { %v179_v7 = vadd.s32 40, %v1295_v2  ;;  %v180_v9 = vadd.s32 48, %v1295_v2  ;;  %v181_v10 = vadd.s32 56, %v1295_v2  ;;  %vm194_vm0 = vcmp.eq.s32.totalorder %v1295_v2, %v1302_v8  ;;  %v935_v31 = vld [vmem:[#allocation5 + $0xa4] ss:$8 sps:$4 sm:$0xff]   ;;  %s853_s17 = sshll.u32 %s1166_s13, 8 }
  0x5a   : > { %vm195_vm1 = vcmp.eq.s32.totalorder %v175_v3, %v1302_v8  ;;  %vm196_vm2 = vcmp.eq.s32.totalorder %v176_v4, %v1302_v8  ;;  %vm197_vm3 = vcmp.eq.s32.totalorder %v177_v5, %v1302_v8  ;;  %v784_v13 = vsel %vm194_vm0, 1.0, %v1128_v12  ;;  %v937_v34 = vld [vmem:[#allocation5 + $0x20] ss:$8 sps:$4 sm:$0xff]   ;;  %v939_v39 = vld [vmem:[#allocation5 + $0x34] ss:$8 sps:$4 sm:$0xff]   ;;  %s170_s26 = scalar_lea.vmem [#allocation7], %s782_s15  ;;  %s1353_s28 = scalar_lea.hbm %s1399_s2, %s853_s17 }
  0x5b   : > { %v785_v14 = vsel %vm195_vm1, 1.0, %v1128_v12  ;;  %v786_v15 = vsel %vm196_vm2, 1.0, %v1128_v12  ;;  %v787_v16 = vsel %vm197_vm3, 1.0, %v1128_v12  ;;  %vm198_vm4 = vcmp.eq.s32.totalorder %v178_v6, %v1302_v8  ;;  %503 = vmatpush1.bf16.msra.mxu0 %v931_v28  ;;  %382 = vmatpush1.bf16.msra.mxu1 %v932_v29  ;;  %v938_v37 = vld [vmem:[#allocation5 + $0xa0] ss:$8 sps:$4 sm:$0xff]   ;;  %s698_s22 = sshll.u32 %s170_s26, 4  ;;  %s1355_s22 = int_to_ptr.vmem [resolvable:$true] %s698_s22 }
  0x5c   : > { %v242_v17 = vpack.c.bf16 %v785_v14, %v784_v13  ;;  %vm199_vm5 = vcmp.eq.s32.totalorder %v179_v7, %v1302_v8  ;;  %v182_v21 = vadd.s32 64, %v1295_v2  ;;  %v243_v23 = vpack.c.bf16 %v787_v16, %v786_v15  ;;  %504 = vmatprep.subr.bf16.mxu0 %v933_v30  ;;  %383 = vmatprep.subr.bf16.mxu1 %v935_v31  ;;  %v941_v40 = vld [vmem:[#allocation5 + $0xb4] ss:$8 sps:$4 sm:$0xff]   ;;  %v943_v46 = vld [vmem:[#allocation5 + $0x30] ss:$8 sps:$4 sm:$0xff]   ;;  %s684_s13 = scalar_lea.sflag [#allocation4], %s1281_s25 }
  0x5d   : > { %v788_v24 = vsel %vm198_vm4, 1.0, %v1128_v12  ;;  %v183_v25 = vadd.s32 72, %v1295_v2  ;;  %v789_v27 = vsel %vm199_vm5, 1.0, %v1128_v12  ;;  %vm200_vm6 = vcmp.eq.s32.totalorder %v180_v9, %v1302_v8  ;;  %v944_v47 = vld [vmem:[#allocation5 + $0xb0] ss:$8 sps:$4 sm:$0xff]   ;;  %s1051_s29 = scalar_lea.vmem %s1355_s22, 256 }
  0x5e   : > { %283 = vxpose.xlu0.c.b16.start [1/8] (narrow) %v242_v17, 16  ;;  %vm201_vm7 = vcmp.eq.s32.totalorder %v181_v10, %v1302_v8  ;;  %v244_v32 = vpack.c.bf16 %v789_v27, %v788_v24  ;;  %v184_v33 = vadd.s32 80, %v1295_v2  ;;  %v790_v35 = vsel %vm200_vm6, 1.0, %v1128_v12  ;;  %v945_v48 = vld [vmem:[#allocation5 + $0x44] ss:$8 sps:$4 sm:$0xff]   ;;  %p1052_p4 = scmp.ne.s32.totalorder %s1355_s22, %s1051_s29  ;;  %s1129_s30 = smov [#allocation7]  }
  0x5f   : > { %v791_v36 = vsel %vm201_vm7, 1.0, %v1128_v12  ;;  %vm202_vm8 = vcmp.eq.s32.totalorder %v182_v21, %v1302_v8  ;;  %vm203_vm9 = vcmp.eq.s32.totalorder %v183_v25, %v1302_v8  ;;  %v185_v38 = vadd.s32 88, %v1295_v2  ;;  %505 = vmatpush1.bf16.msra.mxu0 %v937_v34  ;;  %384 = vmatpush1.bf16.msra.mxu1 %v938_v37  ;;  %v947_v49 = vld [vmem:[#allocation5 + $0xc4] ss:$8 sps:$4 sm:$0xff]   ;;  %v949_v52 = vld [vmem:[#allocation5 + $0x40] ss:$8 sps:$4 sm:$0xff]  }
  0x60   : > { %v186_v41 = vadd.s32 96, %v1295_v2  ;;  %v245_v42 = vpack.c.bf16 %v791_v36, %v790_v35  ;;  %v792_v43 = vsel %vm202_vm8, 1.0, %v1128_v12  ;;  %v793_v44 = vsel %vm203_vm9, 1.0, %v1128_v12  ;;  %506 = vmatprep.subr.bf16.mxu0 %v939_v39  ;;  %385 = vmatprep.subr.bf16.mxu1 %v941_v40  ;;  %v950_v55 = vld [vmem:[#allocation5 + $0xc0] ss:$8 sps:$4 sm:$0xff]   ;;  %p1053_p6 = pnand %p1052_p4, %p1236_p12  ;;  %s1055_s3 = sshll.u32 %s1129_s30, 4  ;;  %s1056_s3 = int_to_ptr.vmem [resolvable:$false] %s1055_s3 }
  0x61   : > { %v187_v45 = vadd.s32 104, %v1295_v2  ;;  %vm204_vm10 = vcmp.eq.s32.totalorder %v184_v33, %v1302_v8  ;;  %vm205_vm11 = vcmp.eq.s32.totalorder %v185_v38, %v1302_v8  ;;  %v246_v50 = vpack.c.bf16 %v793_v44, %v792_v43  ;;  %v951_v57 = vld [vmem:[#allocation5 + $0x54] ss:$8 sps:$4 sm:$0xff]   ;;  %v955_v62 = vld [vmem:[#allocation5 + $0x50] ss:$8 sps:$4 sm:$0xff]   ;;  %s1057_s4 = scalar_lea.vmem %s1056_s3, 512  ;;  %p1058_p10 = scmp.lt.s32.totalorder %s1355_s22, %s1056_s3 }
  0x62   : > { %284 = vxpose.xlu0.c.b16.cont [2/8] (narrow) %v243_v23, 16  ;;  %v188_v51 = vadd.s32 112, %v1295_v2  ;;  %v794_v53 = vsel %vm204_vm10, 1.0, %v1128_v12  ;;  %v795_v54 = vsel %vm205_vm11, 1.0, %v1128_v12  ;;  %vm206_vm12 = vcmp.eq.s32.totalorder %v186_v41, %v1302_v8  ;;  %v953_v58 = vld [vmem:[#allocation5 + $0xd4] ss:$8 sps:$4 sm:$0xff]   ;;  %p1054_p8 = pneg %p1053_p6  ;;  %p1059_p13 = scmp.lt.s32.totalorder %s1057_s4, %s1051_s29 }
  0x63   : > { %vm207_vm13 = vcmp.eq.s32.totalorder %v187_v45, %v1302_v8  ;;  %507 = vmatpush1.bf16.msra.mxu0 %v943_v46  ;;  %386 = vmatpush1.bf16.msra.mxu1 %v944_v47  ;;  %v189_v56 = vadd.s32 120, %v1295_v2  ;;  %v247_v59 = vpack.c.bf16 %v795_v54, %v794_v53  ;;  %v796_v60 = vsel %vm206_vm12, 1.0, %v1128_v12  ;;  %v956_v63 = vld [vmem:[#allocation5 + $0xd0] ss:$8 sps:$4 sm:$0xff]   ;;  %v957_v0 = vld [vmem:[#allocation5 + $0x64] ss:$8 sps:$4 sm:$0xff]  }
  0x64   : > { %508 = vmatprep.subr.bf16.mxu0 %v945_v48  ;;  %387 = vmatprep.subr.bf16.mxu1 %v947_v49  ;;  %v797_v61 = vsel %vm207_vm13, 1.0, %v1128_v12  ;;  %vm208_vm14 = vcmp.eq.s32.totalorder %v188_v51, %v1302_v8  ;;  %v959_v2 = vld [vmem:[#allocation5 + $0xe4] ss:$8 sps:$4 sm:$0xff]   ;;  %v961_v5 = vld [vmem:[#allocation5 + $0x60] ss:$8 sps:$4 sm:$0xff]   ;;  %p1060_p3 = por %p1059_p13, %p1058_p10 }
  0x65   : > { %vm209_vm15 = vcmp.eq.s32.totalorder %v189_v56, %v1302_v8  ;;  %v248_v3 = vpack.c.bf16 %v797_v61, %v796_v60  ;;  %v798_v4 = vsel %vm208_vm14, 1.0, %v1128_v12  ;;  %v962_v7 = vld [vmem:[#allocation5 + $0xe0] ss:$8 sps:$4 sm:$0xff]   ;;  %v963_v9 = vld [vmem:[#allocation5 + $0x74] ss:$8 sps:$4 sm:$0xff]  }
  0x66   : > { %285 = vxpose.xlu0.c.b16.cont [3/8] (narrow) %v244_v32, 16  ;;  %v799_v6 = vsel %vm209_vm15, 1.0, %v1128_v12  ;;  %v965_v10 = vld [vmem:[#allocation5 + $0xf4] ss:$8 sps:$4 sm:$0xff]   ;;  %v967_v8 = vld [vmem:[#allocation5 + $0x70] ss:$8 sps:$4 sm:$0xff]   ;;  %p1061_p7 = pnand %p1060_p3, %p1054_p8 }
  0x67   : > { %509 = vmatpush1.bf16.msra.mxu0 %v949_v52  ;;  %388 = vmatpush1.bf16.msra.mxu1 %v950_v55  ;;  %v249_v11 = vpack.c.bf16 %v799_v6, %v798_v4  ;;  %v968_v13 = vld [vmem:[#allocation5 + $0xf0] ss:$8 sps:$4 sm:$0xff]   ;;  %v971_v14 = vld [vmem:[#allocation5 + $0x104] ss:$8 sps:$4 sm:$0xff]   ;;  %v969_v12 = vld [vmem:[#allocation5 + $0x100] ss:$8 sps:$4 sm:$0xff]  }
  0x68   : > { %510 = vmatprep.subr.bf16.mxu0 %v951_v57  ;;  %389 = vmatprep.subr.bf16.mxu1 %v953_v58  ;;  %v974_v15 = vld [vmem:[#allocation5 + $0x114] ss:$8 sps:$4 sm:$0xff]   ;;  %v972_v17 = vld [vmem:[#allocation5 + $0x110] ss:$8 sps:$4 sm:$0xff]   ;;  %v977_v18 = vld [vmem:[#allocation5 + $0x124] ss:$8 sps:$4 sm:$0xff]  }
  0x69   : > { %v975_v19 = vld [vmem:[#allocation5 + $0x120] ss:$8 sps:$4 sm:$0xff]   ;;  %v980_v20 = vld [vmem:[#allocation5 + $0x134] ss:$8 sps:$4 sm:$0xff]   ;;  %v978_v21 = vld [vmem:[#allocation5 + $0x130] ss:$8 sps:$4 sm:$0xff]  }
  0x6a   : > { %286 = vxpose.xlu0.c.b16.cont [4/8] (narrow) %v245_v42, 16  ;;  %v983_v22 = vld [vmem:[#allocation5 + $0x144] ss:$8 sps:$4 sm:$0xff]   ;;  %v981_v23 = vld [vmem:[#allocation5 + $0x140] ss:$8 sps:$4 sm:$0xff]  }
  0x6b   : > { %511 = vmatpush1.bf16.msra.mxu0 %v955_v62  ;;  %390 = vmatpush1.bf16.msra.mxu1 %v956_v63  ;;  %v986_v24 = vld [vmem:[#allocation5 + $0x154] ss:$8 sps:$4 sm:$0xff]   ;;  %v984_v25 = vld [vmem:[#allocation5 + $0x150] ss:$8 sps:$4 sm:$0xff]   ;;  %v987_v26 = vld [vmem:[#allocation5 + $0x160] ss:$8 sps:$4 sm:$0xff]  }
  0x6c   : > { %512 = vmatprep.subr.bf16.mxu0 %v957_v0  ;;  %391 = vmatprep.subr.bf16.mxu1 %v959_v2  ;;  %v992_v27 = vld [vmem:[#allocation5 + $0x174] ss:$8 sps:$4 sm:$0xff]   ;;  %v990_v28 = vld [vmem:[#allocation5 + $0x170] ss:$8 sps:$4 sm:$0xff]  }
  0x6e   : > { %287 = vxpose.xlu0.c.b16.cont [5/8] (narrow) %v246_v50, 16 }
  0x6f   : > { %513 = vmatpush1.bf16.msra.mxu0 %v961_v5  ;;  %392 = vmatpush1.bf16.msra.mxu1 %v962_v7 }
  0x70   : > { %514 = vmatprep.subr.bf16.mxu0 %v963_v9  ;;  %393 = vmatprep.subr.bf16.mxu1 %v965_v10 }
  0x72   : > { %288 = vxpose.xlu0.c.b16.cont [6/8] (narrow) %v247_v59, 16 }
  0x73   : > { %515 = vmatpush1.bf16.msra.mxu0 %v967_v8  ;;  %394 = vmatpush1.bf16.msra.mxu1 %v968_v13 }
  0x74   : > { %638 = vmatprep.subr.bf16.mxu0 %v971_v14 }
  0x76   : > { %289 = vxpose.xlu0.c.b16.cont [7/8] (narrow) %v248_v3, 16 }
  0x7a   : > { %290 = vxpose.xlu0.c.b16.end [8/8] (narrow) %v249_v11, 16 }
  0xc4   : > { %v291_v16 = vpop.trf.xlu0 }
  0xc5   : > { %412 = vmatmul.mubr.bf16.vlgmr.msra.gmra.mrb[0].mxu1 %v291_v16  ;;  %533 = vmatmul.mubr.bf16.vlgmr.msra.gmra.mrb[0].mxu0 %v291_v16 }
  0xc6   : > { %639 = vmatpush1.bf16.msra.mxu0 %v969_v12  ;;  %670 = vmatprep.mubr.bf16.mxu0 %v1127_v1  ;;  %v989_v1 = vld [vmem:[#allocation5 + $0x164] ss:$8 sps:$4 sm:$0xff]  }
  0xc7   : > { %640 = vmatprep.subr.bf16.mxu0 %v974_v15 }
  0xca   : > { %641 = vmatpush1.bf16.msra.mxu0 %v972_v17 }
  0xcb   : > { %642 = vmatprep.subr.bf16.mxu0 %v977_v18 }
  0xce   : > { %643 = vmatpush1.bf16.msra.mxu0 %v975_v19 }
  0xcf   : > { %644 = vmatprep.subr.bf16.mxu0 %v980_v20 }
  0xd2   : > { %645 = vmatpush1.bf16.msra.mxu0 %v978_v21 }
  0xd3   : > { %646 = vmatprep.subr.bf16.mxu0 %v983_v22 }
  0xd6   : > { %647 = vmatpush1.bf16.msra.mxu0 %v981_v23 }
  0xd7   : > { %648 = vmatprep.subr.bf16.mxu0 %v986_v24 }
  0xda   : > { %649 = vmatpush1.bf16.msra.mxu0 %v984_v25 }
  0xdb   : > { %650 = vmatprep.subr.bf16.mxu0 %v989_v1 }
  0xde   : > { %651 = vmatpush1.bf16.msra.mxu0 %v987_v26 }
  0xdf   : > { %652 = vmatprep.subr.bf16.mxu0 %v992_v27 }
  0xe2   : > { %653 = vmatpush1.bf16.msra.mxu0 %v990_v28 }
  0xe5   : > { %671 = vmatmul.mubr.bf16.vlgmr.msra.gmra.mrb[0].mxu0 %v291_v16 }
 0x198   : > { %v413_v29 = vpop.f32.mrb[0].mxu1 }
 0x199   : > { %v415_v30 = vpop.f32.mrb[1].mxu1 }
 0x19a   : > { %v417_v31 = vpop.f32.mrb[2].mxu1 }
 0x19b   : > { %v418_v32 = vpop.f32.mrb[3].mxu1 }
 0x1b8   : > { %v672_v33 = vpop.f32.mrb[0].mxu0 }
 0x1b9   : > { %v854_v34 = vadd.f32 %v672_v33, %v413_v29  ;;  %v674_v35 = vpop.f32.mrb[1].mxu0 }
 0x1ba   : > { %v855_v36 = vadd.f32 %v674_v35, %v415_v30  ;;  %v676_v37 = vpop.f32.mrb[2].mxu0 }
 0x1bb   : > { %681 = vst [vmem:[%s170_s26] sm:$0xff] %v854_v34  ;;  %v677_v38 = vpop.f32.mrb[3].mxu0 }
 0x1bc   : > { %682 = vst [vmem:[%s170_s26 + $0x8] sm:$0xff] %v855_v36 }
 0x1bd   : > { %1064 = shalt.err (!%p1061_p7)
}
 0x1be   : > { %s1065_s5 = scalar_lea.hbm %s1353_s28, 256  ;;  %s1069_s18 = scalar_lea.hbm %s1399_s2, 512 }
 0x1bf   : > { %p1066_p9 = scmp.ne.s32.totalorder %s1353_s28, %s1065_s5  ;;  %p1070_p0 = scmp.lt.u32.totalorder %s1353_s28, %s1399_s2 }
 0x1c0   : > { %p1071_p1 = scmp.lt.u32.totalorder %s1069_s18, %s1065_s5  ;;  %p1073_p4 = scmp.lt.u32.totalorder %s1065_s5, %s1353_s28 }
 0x1c1   : > { %p1067_p2 = pnand %p1066_p9, %p1236_p12 }
 0x1c2   : > { %p1072_p11 = por %p1071_p1, %p1070_p0 }
 0x1c3   : > { %p1068_p5 = pneg %p1067_p2 }
 0x1c4   : > { %p1074_p6 = por %p1073_p4, %p1072_p11 }
 0x1c6   : > { %p1075_p8 = pnand %p1074_p6, %p1068_p5 }
 0x1c8   : > { %1078 = shalt.err (!%p1075_p8)
}
 0x1c9   : > { %866 = dma.vmem_to_hbm [thread:$0]  (%p1236_p12), %s1355_s22, 256, %s1353_s28, %s684_s13  }
 0x1ca PF: > { %s710_s20 = sand.u32 1, %s1109_s9   ;;  %p1414_p10 = scmp.ne.s32.totalorder %s1404_s16, 0 }
 0x1cb   : > { %p1415_p13 = scmp.ge.s32.totalorder %s1121_s12, 2  ;;  %s711_s19 = scalar_lea.sflag [#allocation4], %s710_s20 }
 0x1cd   : > { %p877_p3 = pnand %p1415_p13, %p1414_p10 }
 0x1cf   : > { %1104 = dma.done.wait (!%p877_p3), %s711_s19, 256  }
 0x1d0   : > { %1106 = vsyncadd (!%p877_p3), %s711_s19, 4294967040  ;;  %p16_p7 = scmp.ge.s32.totalorder %s1201_s21, 4   ;;  %s1416_s9 = smov %s1113_s10 }
 0x1d1   : > { %s1417_s10 = smov %s1117_s11  ;;  %s1418_s11 = smov %s1232_s8 }
 0x1d2   : > { %s1419_s12 = smov %s1201_s21  ;;  %18 = sbr.rel (!%p16_p7) target bundleno = 6 (0x6), region = 79 }
 0x1d9   :  { %716 = vsyncpa [#allocation3], 1 }
 0x1da   :  { %718 = vsyncpa [#allocation3 + $0x1], 1 }
 0x1db   :  { %719 = vsyncpa [#allocation6], 1 }
 0x1dc   :  { %720 = vsyncpa [#allocation4], 1 }
 0x1dd   :  { %722 = vsyncpa [#allocation4 + $0x1], 1 }

</bundles_post_ra>
